<compile_context>
chip_gen: v7x
topology: tpu7x:2x2x1
jax: 0.10.0
libtpu: 0.0.40
codegen_flags: <defaults>
</compile_context>

<pallas_src>
import numpy as np
import jax
import jax.numpy as jnp
from jax import lax
from jax.experimental import pallas as pl
from jax.experimental.pallas import tpu as pltpu

TM_MAX = 512  # max token rows processed per grid step


def qftsp_kernel(ids_ref, emb_ref, phase_ref, out_ref):
    # ids_ref  : VMEM (TM, 1)      int32 -- token ids for this tile
    # emb_ref  : VMEM (vocab, dim) f32   -- full embedding table (resident)
    # phase_ref: VMEM (1, dim)     f32   -- [cos(2*pi*r) | sin(2*pi*r)]
    # out_ref  : VMEM (TM, dim)    f32   -- phase-shifted embeddings tile
    tm = out_ref.shape[0]
    vocab = emb_ref.shape[0]

    ids = ids_ref[...]                                          # (TM, 1)
    iota_v = lax.broadcasted_iota(jnp.int32, (tm, vocab), 1)    # lane iota
    one_hot = (ids == iota_v).astype(emb_ref.dtype)             # (TM, vocab)

    # gathered[t, :] == E[ids[t], :]  -- single MXU matmul; OOB ids -> zeros.
    gathered = jnp.dot(one_hot, emb_ref[...],
                       preferred_element_type=jnp.float32)      # (TM, dim)

    # One broadcast phase multiply per tile (was per-row in the old kernel).
    out_ref[...] = (gathered * phase_ref[...]).astype(out_ref.dtype)


def qftsp_embeddings(x, emb_table, phase_real, phase_imag, tm_max=TM_MAX):
    """Matches torch:
        embeds = E[x]
        cat([embeds[..., :dim//2]*phase_real, embeds[..., dim//2:]*phase_imag], -1)
    """
    B, S = x.shape
    vocab, dim = emb_table.shape
    assert dim % 2 == 0, "dim must be even (dim//2 phase components)"
    n = B * S

    # Sublane-aligned tile size; pad ragged tails instead of asserting.
    tm = min(tm_max, pl.cdiv(n, 8) * 8)
    n_pad = pl.cdiv(n, tm) * tm

    ids = x.reshape(n).astype(jnp.int32)
    if n_pad != n:
        ids = jnp.pad(ids, (0, n_pad - n))          # padded ids gather row 0; sliced off below
    ids2d = ids.reshape(n_pad, 1)

    # Fold the two half-multiplies into one full-width phase vector
    # (cat([a*pr, b*pi]) == cat([a, b]) * cat([pr, pi]) -- exact).
    phase_full = jnp.concatenate([phase_real, phase_imag]).reshape(1, dim).astype(emb_table.dtype)

    out = pl.pallas_call(
        qftsp_kernel,
        out_shape=jax.ShapeDtypeStruct((n_pad, dim), emb_table.dtype),
        grid_spec=pltpu.PrefetchScalarGridSpec(
            num_scalar_prefetch=0,
            grid=(n_pad // tm,),
            in_specs=[
                pl.BlockSpec((tm, 1), lambda i: (i, 0)),       # token-id tile
                pl.BlockSpec((vocab, dim), lambda i: (0, 0)),  # full table, resident
                pl.BlockSpec((1, dim), lambda i: (0, 0)),      # phase vector
            ],
            out_specs=pl.BlockSpec((tm, dim), lambda i: (i, 0)),
        ),
        compiler_params=pltpu.CompilerParams(
            dimension_semantics=("parallel",)),                # lets v7x shard the grid over 2 TCs
    )(ids2d, emb_table, phase_full)
    return out[:n].reshape(B, S, dim)


if __name__ == "__main__":
    vocab_size = 256
    dim = 128           # lane-dense output (>= 128 lanes); small but realistic
    B, S = 2, 64

    key = jax.random.PRNGKey(0)
    k_emb, k_phase, k_x = jax.random.split(key, 3)

    # nn.Embedding default init: N(0, 1)
    emb_table = jax.random.normal(k_emb, (vocab_size, dim), dtype=jnp.float32)
    # torch.rand(dim // 2): uniform [0, 1); phase = exp(2j*pi*r)
    r = jax.random.uniform(k_phase, (dim // 2,), dtype=jnp.float32)
    phase_real = jnp.cos(2.0 * np.pi * r)
    phase_imag = jnp.sin(2.0 * np.pi * r)
    x = jax.random.randint(k_x, (B, S), 0, vocab_size, dtype=jnp.int32)

    out = qftsp_embeddings(x, emb_table, phase_real, phase_imag)
    out = jax.block_until_ready(out)

    # Pure-JAX reference for correctness check.
    embeds = emb_table[x]
    ref = jnp.concatenate(
        [embeds[..., : dim // 2] * phase_real,
         embeds[..., dim // 2:] * phase_imag],
        axis=-1,
    )
    assert out.shape == (B, S, dim)
    np.testing.assert_allclose(np.asarray(out), np.asarray(ref), rtol=1e-6, atol=1e-6)
    print("KERNEL_OK")
</pallas_src>

<mosaic_0001>
module attributes {stable_mosaic.version = 11 : i64} {
  func.func @qftsp_kernel(%arg0: i32, %arg1: memref<128x1xi32, #tpu.memory_space<vmem>>, %arg2: memref<256x128xf32, #tpu.memory_space<vmem>>, %arg3: memref<1x128xf32, #tpu.memory_space<vmem>>, %arg4: memref<128x128xf32, #tpu.memory_space<vmem>>) attributes {dimension_semantics = [#tpu.dimension_semantics<parallel>], iteration_bounds = array<i64: 1>, scalar_prefetch = 0 : i64, scratch_operands = 0 : i64, tpu.core_type = #tpu.core_type<tc>, window_params = [{transform_indices = @transform_0, window_bounds = array<i64: 128, 1>}, {pipeline_mode = #tpu.pipeline_mode<synchronous>, transform_indices = @transform_1, window_bounds = array<i64: 256, 128>}, {pipeline_mode = #tpu.pipeline_mode<synchronous>, transform_indices = @transform_2, window_bounds = array<i64: 1, 128>}, {transform_indices = @transform_3, window_bounds = array<i64: 128, 128>}]} {
    %c0 = arith.constant 0 : index
    %c0_0 = arith.constant 0 : index
    %0 = vector.load %arg1[%c0, %c0_0] : memref<128x1xi32, #tpu.memory_space<vmem>>, vector<128x1xi32>
    %1 = tpu.iota {dimensions = array<i32: 1>} : vector<128x256xi32>
    %2 = vector.broadcast %0 : vector<128x1xi32> to vector<128x256xi32>
    %3 = arith.cmpi eq, %2, %1 : vector<128x256xi32>
    %4 = arith.extui %3 : vector<128x256xi1> to vector<128x256xi32>
    %5 = arith.sitofp %4 : vector<128x256xi32> to vector<128x256xf32>
    %c0_1 = arith.constant 0 : index
    %c0_2 = arith.constant 0 : index
    %6 = vector.load %arg2[%c0_1, %c0_2] : memref<256x128xf32, #tpu.memory_space<vmem>>, vector<256x128xf32>
    %cst = arith.constant dense<0.000000e+00> : vector<128x128xf32>
    %7 = tpu.matmul %5, %6, %cst {dimension_numbers = #tpu.dot_dimension_numbers<[1], [0], [0], [1], [0, 0, 1, 1], [], []>} : vector<128x256xf32>, vector<256x128xf32>, vector<128x128xf32> -> vector<128x128xf32>
    %c0_3 = arith.constant 0 : index
    %c0_4 = arith.constant 0 : index
    %8 = vector.load %arg3[%c0_3, %c0_4] : memref<1x128xf32, #tpu.memory_space<vmem>>, vector<1x128xf32>
    %9 = vector.broadcast %8 : vector<1x128xf32> to vector<128x128xf32>
    %10 = arith.mulf %7, %9 : vector<128x128xf32>
    %c0_5 = arith.constant 0 : index
    %c0_6 = arith.constant 0 : index
    %11 = vector.load %arg4[%c0_5, %c0_6] : memref<128x128xf32, #tpu.memory_space<vmem>>, vector<128x128xf32>
    tpu.vector_store %arg4[%c0_5, %c0_6], %10 {strides = array<i32>} : memref<128x128xf32, #tpu.memory_space<vmem>>, vector<128x128xf32>,
    return
  }
  func.func @transform_0(%arg0: i32) -> (i32, i32) {
    %c0_i32 = arith.constant 0 : i32
    %c0_i32_0 = arith.constant 0 : i32
    return %arg0, %c0_i32 : i32, i32
  }
  func.func @transform_1(%arg0: i32) -> (i32, i32) {
    %c0_i32 = arith.constant 0 : i32
    %c0_i32_0 = arith.constant 0 : i32
    %c0_i32_1 = arith.constant 0 : i32
    return %c0_i32, %c0_i32_0 : i32, i32
  }
  func.func @transform_2(%arg0: i32) -> (i32, i32) {
    %c0_i32 = arith.constant 0 : i32
    %c0_i32_0 = arith.constant 0 : i32
    %c0_i32_1 = arith.constant 0 : i32
    return %c0_i32, %c0_i32_0 : i32, i32
  }
  func.func @transform_3(%arg0: i32) -> (i32, i32) {
    %c0_i32 = arith.constant 0 : i32
    %c0_i32_0 = arith.constant 0 : i32
    return %arg0, %c0_i32 : i32, i32
  }
}

</mosaic_0001>

<bundles_post_ra>
// kernel: tpu_custom_call.1
= control target key start
LH: loop header
LB: loop body
LE: loop exit
PB: predicated region body
PF: predicated region fallthrough
CT: control target
= control target key end

     0   :  { %8 = vsyncpa [#allocation3], 0  ;;  %s868_s0 = inlined_call_operand.vmem [shape: s32[128,1], index: 0, kind: input, shape index: {}]   ;;  %s869_s1 = inlined_call_operand.hbm [shape: f32[256,128], index: 1, kind: input, shape index: {}]   ;;  %s870_s2 = inlined_call_operand.vmem [shape: f32[1,128], index: 2, kind: input, shape index: {}]   ;;  %s871_s3 = inlined_call_operand.hbm [shape: f32[128,128], index: 3, kind: output, shape index: {}]  }
   0x1   :  { %9 = vsyncpa [#allocation4], 0  ;;  %s674_s12 = smov [#allocation2]   ;;  %s626_s16 = scalar_lea.hbm %s869_s1, 4096 }
   0x2   :  { %s17_s13 = sshll.u32 %s674_s12, 4  ;;  %p627_p0 = scmp.ne.s32.totalorder %s869_s1, %s626_s16  ;;  %s18_s13 = int_to_ptr.vmem [resolvable:$true] %s17_s13 }
   0x3   :  { %p630_p1 = scmp.lt.u32.totalorder %s626_s16, %s869_s1 }
   0x5   :  { %p632_p2 = pnand %p630_p1, %p627_p0 }
   0x7   :  { %635 = shalt.err (!%p632_p2)
}
   0x8   :  { %s636_s21 = scalar_lea.vmem %s18_s13, 4096  ;;  %p641_p4 = scmp.lt.s32.totalorder %s18_s13, %s18_s13 }
   0x9   :  { %p637_p3 = scmp.ne.s32.totalorder %s18_s13, %s636_s21  ;;  %p642_p5 = scmp.lt.s32.totalorder %s636_s21, %s636_s21 }
   0xb   :  { %p643_p6 = por %p642_p5, %p641_p4 }
   0xd   :  { %p644_p7 = pnand %p643_p6, %p637_p3 }
   0xf   :  { %647 = shalt.err (!%p644_p7)
}
  0x10   :  { %s675_s22 = smov 128   ;;  %s676_s23 = smov 8  }
  0x11   :  { %23 = dma.hbm_to_vmem [thread:$0]  %s869_s1, 4096, %s18_s13, [#allocation3], %s675_s22, %s675_s22, %s676_s23  }
  0x12   :  { %670 = dma.done.wait [#allocation3], 4096  }
  0x13   :  { %671 = vsyncadd [#allocation3], 4294963200  ;;  %v677_v0 = vmov 0   ;;  %v30_v1 = vld [vmem:[%s868_s0 + $0x8] sm:$0xff]  ;;  %v29_v2 = vld [vmem:[%s868_s0] sm:$0xff] }
  0x14   :  { %625 = vset.pattern.permute.xlu1 %v677_v0  ;;  %624 = vset.pattern.permute.xlu0 %v677_v0  ;;  %v38_v3 = vld [vmem:[%s868_s0 + $0x48] sm:$0xff]  ;;  %v37_v4 = vld [vmem:[%s868_s0 + $0x40] sm:$0xff]  ;;  %v39_v5 = vld [vmem:[%s868_s0 + $0x50] sm:$0xff] }
  0x15   :  { %52 = vperm.xlu1 %625, %v30_v1   ;;  %49 = vperm.xlu0 %624, %v29_v2   ;;  %v31_v6 = vld [vmem:[%s868_s0 + $0x10] sm:$0xff]  ;;  %v208_v7 = vld [vmem:[#allocation2 + $0x80] sm:$0xff]  ;;  %v209_v8 = vld [vmem:[#allocation2 + $0x88] sm:$0xff]  ;;  %v45_v1 = vlaneseq }
  0x16   :  { %v570_v9 = vpack.c.bf16 %v209_v8, %v208_v7  ;;  %v192_v10 = vld [vmem:[#allocation2] sm:$0xff]  ;;  %v193_v11 = vld [vmem:[#allocation2 + $0x8] sm:$0xff]  ;;  %v210_v12 = vld [vmem:[#allocation2 + $0x90] sm:$0xff] }
  0x17   :  { %v572_v13 = vpack.c.bf16 %v193_v11, %v192_v10  ;;  %v211_v14 = vld [vmem:[#allocation2 + $0x98] sm:$0xff]  ;;  %v194_v15 = vld [vmem:[#allocation2 + $0x10] sm:$0xff]  ;;  %v212_v18 = vld [vmem:[#allocation2 + $0xa0] sm:$0xff]  ;;  %v763_v2 = vand.u32 127, %v45_v1 }
  0x18   :  { %v195_v16 = vld [vmem:[#allocation2 + $0x18] sm:$0xff]  ;;  %571 = vmatprep.subr.bf16.mxu0 %v570_v9  ;;  %602 = vmatprep.subr.bf16.mxu1 %v570_v9  ;;  %v574_v17 = vpack.c.bf16 %v211_v14, %v210_v12  ;;  %v213_v19 = vld [vmem:[#allocation2 + $0xa8] sm:$0xff]  ;;  %v196_v24 = vld [vmem:[#allocation2 + $0x20] sm:$0xff] }
  0x19   :  { %76 = vperm.xlu1 %625, %v38_v3   ;;  %73 = vperm.xlu0 %624, %v37_v4   ;;  %v40_v20 = vld [vmem:[%s868_s0 + $0x58] sm:$0xff]  ;;  %v576_v22 = vpack.c.bf16 %v195_v16, %v194_v15  ;;  %v578_v23 = vpack.c.bf16 %v213_v19, %v212_v18  ;;  %v197_v25 = vld [vmem:[#allocation2 + $0x28] sm:$0xff]  ;;  %v214_v26 = vld [vmem:[#allocation2 + $0xb0] sm:$0xff]  ;;  %v766_v3 = vadd.s32 128, %v763_v2 }
  0x1a   :  { %v32_v21 = vld [vmem:[%s868_s0 + $0x18] sm:$0xff]  ;;  %573 = vmatpush3.bf16.msra.mxu0 %v572_v13  ;;  %610 = vmatpush3.bf16.msra.mxu1 %v572_v13  ;;  %v41_v28 = vld [vmem:[%s868_s0 + $0x60] sm:$0xff]  ;;  %v580_v30 = vpack.c.bf16 %v197_v25, %v196_v24  ;;  %v198_v32 = vld [vmem:[#allocation2 + $0x30] sm:$0xff] }
  0x1b   :  { %575 = vmatprep.subr.bf16.mxu0 %v574_v17  ;;  %603 = vmatprep.subr.bf16.mxu1 %v574_v17  ;;  %v215_v27 = vld [vmem:[#allocation2 + $0xb8] sm:$0xff]  ;;  %v33_v29 = vld [vmem:[%s868_s0 + $0x20] sm:$0xff]  ;;  %v217_v35 = vld [vmem:[#allocation2 + $0xc8] sm:$0xff] }
  0x1c   :  { %v582_v31 = vpack.c.bf16 %v215_v27, %v214_v26  ;;  %v199_v33 = vld [vmem:[#allocation2 + $0x38] sm:$0xff]  ;;  %v216_v34 = vld [vmem:[#allocation2 + $0xc0] sm:$0xff]  ;;  %v42_v36 = vld [vmem:[%s868_s0 + $0x68] sm:$0xff] }
  0x1d   :  { %79 = vperm.xlu1 %625, %v39_v5   ;;  %55 = vperm.xlu0 %624, %v31_v6   ;;  %v34_v37 = vld [vmem:[%s868_s0 + $0x28] sm:$0xff]  ;;  %v584_v38 = vpack.c.bf16 %v199_v33, %v198_v32  ;;  %v586_v39 = vpack.c.bf16 %v217_v35, %v216_v34  ;;  %v200_v40 = vld [vmem:[#allocation2 + $0x40] sm:$0xff]  ;;  %v218_v42 = vld [vmem:[#allocation2 + $0xd0] sm:$0xff]  ;;  %v678_v6 = vmov 1.0  }
  0x1e   :  { %577 = vmatpush3.bf16.msra.mxu0 %v576_v22  ;;  %611 = vmatpush3.bf16.msra.mxu1 %v576_v22  ;;  %v201_v41 = vld [vmem:[#allocation2 + $0x48] sm:$0xff]  ;;  %v219_v43 = vld [vmem:[#allocation2 + $0xd8] sm:$0xff]  ;;  %v43_v44 = vld [vmem:[%s868_s0 + $0x70] sm:$0xff] }
  0x1f   :  { %579 = vmatprep.subr.bf16.mxu0 %v578_v23  ;;  %604 = vmatprep.subr.bf16.mxu1 %v578_v23  ;;  %v35_v45 = vld [vmem:[%s868_s0 + $0x30] sm:$0xff]  ;;  %v588_v46 = vpack.c.bf16 %v201_v41, %v200_v40  ;;  %v590_v47 = vpack.c.bf16 %v219_v43, %v218_v42  ;;  %v203_v49 = vld [vmem:[#allocation2 + $0x58] sm:$0xff]  ;;  %v220_v50 = vld [vmem:[#allocation2 + $0xe0] sm:$0xff] }
  0x20   :  { %v202_v48 = vld [vmem:[#allocation2 + $0x50] sm:$0xff]  ;;  %v221_v51 = vld [vmem:[#allocation2 + $0xe8] sm:$0xff]  ;;  %v44_v52 = vld [vmem:[%s868_s0 + $0x78] sm:$0xff] }
  0x21   :  { %82 = vperm.xlu1 %625, %v40_v20   ;;  %58 = vperm.xlu0 %624, %v32_v21   ;;  %v36_v53 = vld [vmem:[%s868_s0 + $0x38] sm:$0xff]  ;;  %v592_v54 = vpack.c.bf16 %v203_v49, %v202_v48  ;;  %v594_v55 = vpack.c.bf16 %v221_v51, %v220_v50  ;;  %v204_v56 = vld [vmem:[#allocation2 + $0x60] sm:$0xff]  ;;  %v205_v57 = vld [vmem:[#allocation2 + $0x68] sm:$0xff] }
  0x22   :  { %581 = vmatpush3.bf16.msra.mxu0 %v580_v30  ;;  %612 = vmatpush3.bf16.msra.mxu1 %v580_v30  ;;  %v222_v58 = vld [vmem:[#allocation2 + $0xf0] sm:$0xff]  ;;  %v223_v59 = vld [vmem:[#allocation2 + $0xf8] sm:$0xff]  ;;  %v596_v60 = vpack.c.bf16 %v205_v57, %v204_v56  ;;  %v835_v23 = vld [vmem:[%s870_s2] ss:$0 sm:$0xff]  ;;  %s679_s2 = smov [#allocation5]  }
  0x23   :  { %583 = vmatprep.subr.bf16.mxu0 %v582_v31  ;;  %605 = vmatprep.subr.bf16.mxu1 %v582_v31  ;;  %v598_v61 = vpack.c.bf16 %v223_v59, %v222_v58  ;;  %v206_v62 = vld [vmem:[#allocation2 + $0x70] sm:$0xff]  ;;  %v207_v63 = vld [vmem:[#allocation2 + $0x78] sm:$0xff]  ;;  %s413_s5 = sshll.u32 %s679_s2, 4  ;;  %s414_s5 = int_to_ptr.vmem [resolvable:$true] %s413_s5 }
  0x24   :  { %v600_v0 = vpack.c.bf16 %v207_v63, %v206_v62  ;;  %s648_s6 = scalar_lea.vmem %s414_s5, 2048  ;;  %p653_p9 = scmp.lt.s32.totalorder %s414_s5, %s414_s5 }
  0x25   :  { %85 = vperm.xlu1 %625, %v41_v28   ;;  %61 = vperm.xlu0 %624, %v33_v29   ;;  %p649_p8 = scmp.ne.s32.totalorder %s414_s5, %s648_s6  ;;  %p654_p10 = scmp.lt.s32.totalorder %s648_s6, %s648_s6 }
  0x26   :  { %585 = vmatpush3.bf16.msra.mxu0 %v584_v38  ;;  %613 = vmatpush3.bf16.msra.mxu1 %v584_v38 }
  0x27   :  { %587 = vmatprep.subr.bf16.mxu0 %v586_v39  ;;  %606 = vmatprep.subr.bf16.mxu1 %v586_v39  ;;  %p655_p11 = por %p654_p10, %p653_p9 }
  0x29   :  { %88 = vperm.xlu1 %625, %v42_v36   ;;  %64 = vperm.xlu0 %624, %v34_v37   ;;  %p656_p12 = pnand %p655_p11, %p649_p8 }
  0x2a   :  { %589 = vmatpush3.bf16.msra.mxu0 %v588_v46  ;;  %614 = vmatpush3.bf16.msra.mxu1 %v588_v46 }
  0x2b   :  { %591 = vmatprep.subr.bf16.mxu0 %v590_v47  ;;  %607 = vmatprep.subr.bf16.mxu1 %v590_v47 }
  0x2d   :  { %91 = vperm.xlu1 %625, %v43_v44   ;;  %67 = vperm.xlu0 %624, %v35_v45  }
  0x2e   :  { %593 = vmatpush3.bf16.msra.mxu0 %v592_v54  ;;  %615 = vmatpush3.bf16.msra.mxu1 %v592_v54 }
  0x2f   :  { %595 = vmatprep.subr.bf16.mxu0 %v594_v55  ;;  %608 = vmatprep.subr.bf16.mxu1 %v594_v55 }
  0x31   :  { %94 = vperm.xlu1 %625, %v44_v52   ;;  %70 = vperm.xlu0 %624, %v36_v53  }
  0x32   :  { %597 = vmatpush3.bf16.msra.mxu0 %v596_v60  ;;  %616 = vmatpush3.bf16.msra.mxu1 %v596_v60 }
  0x33   :  { %599 = vmatprep.subr.bf16.mxu0 %v598_v61  ;;  %609 = vmatprep.subr.bf16.mxu1 %v598_v61 }
  0x36   :  { %601 = vmatpush3.bf16.msra.mxu0 %v600_v0  ;;  %617 = vmatpush3.bf16.msra.mxu1 %v600_v0 }
  0x94   :  { %v53_v4 = vpop.permute.xlu1 %52  ;;  %v50_v5 = vpop.permute.xlu0 %49 }
  0x95   :  { %vm99_vm0 = vcmp.eq.s32.totalorder %v53_v4, %v766_v3  ;;  %vm96_vm1 = vcmp.eq.s32.totalorder %v50_v5, %v763_v2  ;;  %vm97_vm2 = vcmp.eq.s32.totalorder %v50_v5, %v766_v3  ;;  %vm98_vm3 = vcmp.eq.s32.totalorder %v53_v4, %v763_v2 }
  0x96   :  { %457 = vmatprep.mubr.msk.f32.mxu0 %vm97_vm2, %v678_v6 }
  0x97   :  { %458 = vmatmul.mubr.msk.f32.vlgmr.msra.gmra.mrb[0].mxu0 %vm96_vm1, %v678_v6 }
  0x98   :  { %v77_v7 = vpop.permute.xlu1 %76  ;;  %v74_v8 = vpop.permute.xlu0 %73  ;;  %459 = vmatprep.mubr.msk.f32.mxu0 %vm99_vm0, %v678_v6 }
  0x99   :  { %vm112_vm4 = vcmp.eq.s32.totalorder %v74_v8, %v763_v2  ;;  %vm113_vm5 = vcmp.eq.s32.totalorder %v74_v8, %v766_v3  ;;  %vm115_vm6 = vcmp.eq.s32.totalorder %v77_v7, %v766_v3  ;;  %vm114_vm9 = vcmp.eq.s32.totalorder %v77_v7, %v763_v2 }
  0x9a   :  { %473 = vmatprep.mubr.msk.f32.mxu1 %vm113_vm5, %v678_v6 }
  0x9b   :  { %460 = vmatmul.mubr.msk.f32.gmra.mrb[2].mxu0 %vm98_vm3, %v678_v6  ;;  %474 = vmatmul.mubr.msk.f32.vlgmr.msra.gmra.mrb[0].mxu1 %vm112_vm4, %v678_v6 }
  0x9c   :  { %v80_v9 = vpop.permute.xlu1 %79  ;;  %475 = vmatprep.mubr.msk.f32.mxu1 %vm115_vm6, %v678_v6  ;;  %v56_v10 = vpop.permute.xlu0 %55 }
  0x9d   :  { %vm100_vm7 = vcmp.eq.s32.totalorder %v56_v10, %v763_v2  ;;  %vm101_vm8 = vcmp.eq.s32.totalorder %v56_v10, %v766_v3  ;;  %vm117_vm10 = vcmp.eq.s32.totalorder %v80_v9, %v766_v3  ;;  %vm116_vm13 = vcmp.eq.s32.totalorder %v80_v9, %v763_v2 }
  0x9e   :  { %461 = vmatprep.mubr.msk.f32.mxu0 %vm101_vm8, %v678_v6 }
  0x9f   :  { %462 = vmatmul.mubr.msk.f32.gmra.mrb[4].mxu0 %vm100_vm7, %v678_v6  ;;  %476 = vmatmul.mubr.msk.f32.gmra.mrb[2].mxu1 %vm114_vm9, %v678_v6 }
  0xa0   :  { %v83_v11 = vpop.permute.xlu1 %82  ;;  %477 = vmatprep.mubr.msk.f32.mxu1 %vm117_vm10, %v678_v6  ;;  %v59_v12 = vpop.permute.xlu0 %58 }
  0xa1   :  { %vm102_vm11 = vcmp.eq.s32.totalorder %v59_v12, %v763_v2  ;;  %vm103_vm12 = vcmp.eq.s32.totalorder %v59_v12, %v766_v3  ;;  %vm119_vm14 = vcmp.eq.s32.totalorder %v83_v11, %v766_v3  ;;  %vm118_vm1 = vcmp.eq.s32.totalorder %v83_v11, %v763_v2 }
  0xa2   :  { %463 = vmatprep.mubr.msk.f32.mxu0 %vm103_vm12, %v678_v6 }
  0xa3   :  { %464 = vmatmul.mubr.msk.f32.gmra.mrb[6].mxu0 %vm102_vm11, %v678_v6  ;;  %478 = vmatmul.mubr.msk.f32.gmra.mrb[4].mxu1 %vm116_vm13, %v678_v6 }
  0xa4   :  { %v86_v13 = vpop.permute.xlu1 %85  ;;  %479 = vmatprep.mubr.msk.f32.mxu1 %vm119_vm14, %v678_v6  ;;  %v62_v14 = vpop.permute.xlu0 %61 }
  0xa5   :  { %vm104_vm15 = vcmp.eq.s32.totalorder %v62_v14, %v763_v2  ;;  %vm105_vm0 = vcmp.eq.s32.totalorder %v62_v14, %v766_v3  ;;  %vm121_vm2 = vcmp.eq.s32.totalorder %v86_v13, %v766_v3  ;;  %vm120_vm5 = vcmp.eq.s32.totalorder %v86_v13, %v763_v2 }
  0xa6   :  { %465 = vmatprep.mubr.msk.f32.mxu0 %vm105_vm0, %v678_v6 }
  0xa7   :  { %466 = vmatmul.mubr.msk.f32.gmra.mrb[8].mxu0 %vm104_vm15, %v678_v6  ;;  %480 = vmatmul.mubr.msk.f32.gmra.mrb[6].mxu1 %vm118_vm1, %v678_v6 }
  0xa8   :  { %v89_v15 = vpop.permute.xlu1 %88  ;;  %481 = vmatprep.mubr.msk.f32.mxu1 %vm121_vm2, %v678_v6  ;;  %v65_v16 = vpop.permute.xlu0 %64 }
  0xa9   :  { %vm106_vm3 = vcmp.eq.s32.totalorder %v65_v16, %v763_v2  ;;  %vm107_vm4 = vcmp.eq.s32.totalorder %v65_v16, %v766_v3  ;;  %vm123_vm6 = vcmp.eq.s32.totalorder %v89_v15, %v766_v3  ;;  %vm122_vm9 = vcmp.eq.s32.totalorder %v89_v15, %v763_v2 }
  0xaa   :  { %467 = vmatprep.mubr.msk.f32.mxu0 %vm107_vm4, %v678_v6 }
  0xab   :  { %468 = vmatmul.mubr.msk.f32.gmra.mrb[10].mxu0 %vm106_vm3, %v678_v6  ;;  %482 = vmatmul.mubr.msk.f32.gmra.mrb[8].mxu1 %vm120_vm5, %v678_v6 }
  0xac   :  { %v92_v17 = vpop.permute.xlu1 %91  ;;  %483 = vmatprep.mubr.msk.f32.mxu1 %vm123_vm6, %v678_v6  ;;  %v68_v18 = vpop.permute.xlu0 %67 }
  0xad   :  { %vm108_vm7 = vcmp.eq.s32.totalorder %v68_v18, %v763_v2  ;;  %vm109_vm8 = vcmp.eq.s32.totalorder %v68_v18, %v766_v3  ;;  %vm125_vm10 = vcmp.eq.s32.totalorder %v92_v17, %v766_v3  ;;  %vm124_vm13 = vcmp.eq.s32.totalorder %v92_v17, %v763_v2 }
  0xae   :  { %469 = vmatprep.mubr.msk.f32.mxu0 %vm109_vm8, %v678_v6 }
  0xaf   :  { %470 = vmatmul.mubr.msk.f32.gmra.mrb[12].mxu0 %vm108_vm7, %v678_v6  ;;  %484 = vmatmul.mubr.msk.f32.gmra.mrb[10].mxu1 %vm122_vm9, %v678_v6 }
  0xb0   :  { %v95_v19 = vpop.permute.xlu1 %94  ;;  %485 = vmatprep.mubr.msk.f32.mxu1 %vm125_vm10, %v678_v6  ;;  %v71_v20 = vpop.permute.xlu0 %70 }
  0xb1   :  { %vm110_vm11 = vcmp.eq.s32.totalorder %v71_v20, %v763_v2  ;;  %vm111_vm12 = vcmp.eq.s32.totalorder %v71_v20, %v766_v3  ;;  %vm127_vm14 = vcmp.eq.s32.totalorder %v95_v19, %v766_v3  ;;  %vm126_vm15 = vcmp.eq.s32.totalorder %v95_v19, %v763_v2 }
  0xb2   :  { %471 = vmatprep.mubr.msk.f32.mxu0 %vm111_vm12, %v678_v6 }
  0xb3   :  { %472 = vmatmul.mubr.msk.f32.gmra.mrb[14].mxu0 %vm110_vm11, %v678_v6  ;;  %486 = vmatmul.mubr.msk.f32.gmra.mrb[12].mxu1 %vm124_vm13, %v678_v6 }
  0xb4   :  { %487 = vmatprep.mubr.msk.f32.mxu1 %vm127_vm14, %v678_v6 }
  0xb7   :  { %488 = vmatmul.mubr.msk.f32.gmra.mrb[14].mxu1 %vm126_vm15, %v678_v6 }
 0x16a   :  { %v522_v21 = vpop.f32.mrb[0].mxu0 }
 0x16b   :  { %v523_v22 = vpop.f32.mrb[1].mxu0 }
 0x16c   :  { %v524_v24 = vadd.f32 %v523_v22, %v522_v21 }
 0x16e   :  { %v376_v25 = vmul.f32 %v524_v24, %v835_v23  ;;  %v525_v26 = vpop.f32.mrb[2].mxu0  ;;  %v546_v27 = vpop.f32.mrb[0].mxu1 }
 0x16f   :  { %v526_v28 = vpop.f32.mrb[3].mxu0  ;;  %v547_v29 = vpop.f32.mrb[1].mxu1 }
 0x170   :  { %392 = vst [vmem:[#allocation5] sm:$0xff] %v376_v25  ;;  %v527_v30 = vadd.f32 %v526_v28, %v525_v26  ;;  %v548_v31 = vadd.f32 %v547_v29, %v546_v27 }
 0x172   :  { %v377_v32 = vmul.f32 %v527_v30, %v835_v23  ;;  %v384_v33 = vmul.f32 %v548_v31, %v835_v23  ;;  %v528_v34 = vpop.f32.mrb[4].mxu0  ;;  %v549_v35 = vpop.f32.mrb[2].mxu1 }
 0x173   :  { %v529_v36 = vpop.f32.mrb[5].mxu0  ;;  %v550_v37 = vpop.f32.mrb[3].mxu1 }
 0x174   :  { %393 = vst [vmem:[#allocation5 + $0x8] sm:$0xff] %v377_v32  ;;  %400 = vst [vmem:[#allocation5 + $0x40] sm:$0xff] %v384_v33  ;;  %v530_v38 = vadd.f32 %v529_v36, %v528_v34  ;;  %v551_v39 = vadd.f32 %v550_v37, %v549_v35 }
 0x176   :  { %v378_v40 = vmul.f32 %v530_v38, %v835_v23  ;;  %v385_v41 = vmul.f32 %v551_v39, %v835_v23  ;;  %v531_v42 = vpop.f32.mrb[6].mxu0  ;;  %v552_v43 = vpop.f32.mrb[4].mxu1 }
 0x177   :  { %v532_v44 = vpop.f32.mrb[7].mxu0  ;;  %v553_v45 = vpop.f32.mrb[5].mxu1 }
 0x178   :  { %394 = vst [vmem:[#allocation5 + $0x10] sm:$0xff] %v378_v40  ;;  %401 = vst [vmem:[#allocation5 + $0x48] sm:$0xff] %v385_v41  ;;  %v533_v46 = vadd.f32 %v532_v44, %v531_v42  ;;  %v554_v47 = vadd.f32 %v553_v45, %v552_v43 }
 0x17a   :  { %v379_v48 = vmul.f32 %v533_v46, %v835_v23  ;;  %v386_v49 = vmul.f32 %v554_v47, %v835_v23  ;;  %v534_v50 = vpop.f32.mrb[8].mxu0  ;;  %v555_v51 = vpop.f32.mrb[6].mxu1 }
 0x17b   :  { %v535_v52 = vpop.f32.mrb[9].mxu0  ;;  %v556_v53 = vpop.f32.mrb[7].mxu1 }
 0x17c   :  { %395 = vst [vmem:[#allocation5 + $0x18] sm:$0xff] %v379_v48  ;;  %402 = vst [vmem:[#allocation5 + $0x50] sm:$0xff] %v386_v49  ;;  %v536_v54 = vadd.f32 %v535_v52, %v534_v50  ;;  %v557_v55 = vadd.f32 %v556_v53, %v555_v51 }
 0x17e   :  { %v380_v56 = vmul.f32 %v536_v54, %v835_v23  ;;  %v387_v57 = vmul.f32 %v557_v55, %v835_v23  ;;  %v537_v58 = vpop.f32.mrb[10].mxu0  ;;  %v558_v59 = vpop.f32.mrb[8].mxu1 }
 0x17f   :  { %v538_v60 = vpop.f32.mrb[11].mxu0  ;;  %v559_v61 = vpop.f32.mrb[9].mxu1 }
 0x180   :  { %396 = vst [vmem:[#allocation5 + $0x20] sm:$0xff] %v380_v56  ;;  %403 = vst [vmem:[#allocation5 + $0x58] sm:$0xff] %v387_v57  ;;  %v539_v62 = vadd.f32 %v538_v60, %v537_v58  ;;  %v560_v63 = vadd.f32 %v559_v61, %v558_v59 }
 0x182   :  { %v381_v0 = vmul.f32 %v539_v62, %v835_v23  ;;  %v388_v1 = vmul.f32 %v560_v63, %v835_v23  ;;  %v540_v2 = vpop.f32.mrb[12].mxu0  ;;  %v561_v3 = vpop.f32.mrb[10].mxu1 }
 0x183   :  { %v541_v4 = vpop.f32.mrb[13].mxu0  ;;  %v562_v5 = vpop.f32.mrb[11].mxu1 }
 0x184   :  { %397 = vst [vmem:[#allocation5 + $0x28] sm:$0xff] %v381_v0  ;;  %404 = vst [vmem:[#allocation5 + $0x60] sm:$0xff] %v388_v1  ;;  %v542_v6 = vadd.f32 %v541_v4, %v540_v2  ;;  %v563_v7 = vadd.f32 %v562_v5, %v561_v3 }
 0x186   :  { %v382_v8 = vmul.f32 %v542_v6, %v835_v23  ;;  %v389_v9 = vmul.f32 %v563_v7, %v835_v23  ;;  %v543_v10 = vpop.f32.mrb[14].mxu0  ;;  %v564_v11 = vpop.f32.mrb[12].mxu1 }
 0x187   :  { %v544_v12 = vpop.f32.mrb[15].mxu0  ;;  %v565_v13 = vpop.f32.mrb[13].mxu1 }
 0x188   :  { %398 = vst [vmem:[#allocation5 + $0x30] sm:$0xff] %v382_v8  ;;  %405 = vst [vmem:[#allocation5 + $0x68] sm:$0xff] %v389_v9  ;;  %v545_v14 = vadd.f32 %v544_v12, %v543_v10  ;;  %v566_v15 = vadd.f32 %v565_v13, %v564_v11 }
 0x18a   :  { %v383_v16 = vmul.f32 %v545_v14, %v835_v23  ;;  %v390_v17 = vmul.f32 %v566_v15, %v835_v23  ;;  %v567_v18 = vpop.f32.mrb[14].mxu1 }
 0x18b   :  { %v568_v19 = vpop.f32.mrb[15].mxu1 }
 0x18c   :  { %399 = vst [vmem:[#allocation5 + $0x38] sm:$0xff] %v383_v16  ;;  %406 = vst [vmem:[#allocation5 + $0x70] sm:$0xff] %v390_v17  ;;  %v569_v20 = vadd.f32 %v568_v19, %v567_v18 }
 0x18e   :  { %v391_v21 = vmul.f32 %v569_v20, %v835_v23 }
 0x190   :  { %407 = vst [vmem:[#allocation5 + $0x78] sm:$0xff] %v391_v21 }
 0x191   :  { %659 = shalt.err (!%p656_p12)
}
 0x192   :  { %s660_s9 = scalar_lea.hbm %s871_s3, 2048 }
 0x193   :  { %p661_p13 = scmp.ne.s32.totalorder %s871_s3, %s660_s9  ;;  %p664_p0 = scmp.lt.u32.totalorder %s660_s9, %s871_s3 }
 0x195   :  { %p666_p1 = pnand %p664_p0, %p661_p13 }
 0x197   :  { %669 = shalt.err (!%p666_p1)
}
 0x198   :  { %419 = dma.vmem_to_hbm [thread:$0]  %s414_s5, 2048, %s871_s3, [#allocation4], %s675_s22, %s675_s22, %s676_s23  }
 0x199   :  { %672 = dma.done.wait [#allocation4], 2048  }
 0x19a   :  { %673 = vsyncadd [#allocation4], 4294965248 }
 0x19b   :  { %423 = vsyncpa [#allocation3], 1 }
 0x19c   :  { %424 = vsyncpa [#allocation4], 1 }

</bundles_post_ra>
